<compile_context>
chip_gen: v7x
topology: tpu7x:2x2x1
jax: 0.10.0
libtpu: 0.0.40
codegen_flags: <defaults>
</compile_context>

<pallas_src>
import jax
import jax.numpy as jnp
import numpy as np
from jax.experimental import pallas as pl
from jax.experimental.pallas import tpu as pltpu


def fused_kernel(x_ref, w1t_ref, b1_ref, w2t_ref, b2_ref, o_ref):
    # x_ref:   (Cin,  TILE_S)  activations, spatial positions on lanes (f32)
    # w1t_ref: (Cmid, Cin)     first 1x1 weight, transposed, f32 (VPU path)
    # b1_ref:  (Cmid, 1)       f32
    # w2t_ref: (Cout, Cmid)    second 1x1 weight, f32 or bf16 (MXU path)
    # b2_ref:  (Cout, 1)       f32
    # o_ref:   (Cout, TILE_S)  lane-dense output tile, f32
    x = x_ref[...]
    w1t = w1t_ref[...]
    cin = w1t.shape[1]

    # K == Cin is tiny (3): unrolled outer-product FMAs on the VPU instead of
    # an almost-empty MXU contraction.  Kept f32 (v5e has no bf16 VPU/EUP).
    # (A stride-0 sublane-broadcast load is a further micro-opt here.)
    h = w1t[:, 0:1] * x[0:1, :]
    for c in range(1, cin):
        h = h + w1t[:, c:c + 1] * x[c:c + 1, :]

    h = jax.nn.sigmoid(h + b1_ref[...])                       # o1 = Sigmoid()

    # Second 1x1 conv: MXU matmul, f32 accumulation.  If the weights were
    # prepared as bf16 (v6e/v7x), cast only the dot operands — h stays f32
    # through the sigmoid.
    w2t = w2t_ref[...]
    y = jnp.dot(w2t, h.astype(w2t.dtype), preferred_element_type=jnp.float32)
    o_ref[...] = (y + b2_ref[...]).astype(o_ref.dtype)


def prepare_weights(w1, b1, w2, b2, mxu_dtype=jnp.float32):
    """Hoisted out of the per-call path: weight-stationary layouts, built once.

    w1, w2 are the collapsed ConvTranspose2d weights of shape (Cin, Cout).
    mxu_dtype=jnp.bfloat16 is recommended on v6e/v7x (f32 accumulation kept).
    """
    w1t = jnp.transpose(w1).astype(jnp.float32)    # (Cmid, Cin)  VPU path: f32
    b1c = b1.reshape(-1, 1).astype(jnp.float32)    # (Cmid, 1)
    w2t = jnp.transpose(w2).astype(mxu_dtype)      # (Cout, Cmid) MXU path
    b2c = b2.reshape(-1, 1).astype(jnp.float32)    # (Cout, 1)
    return w1t, b1c, w2t, b2c


def _round_up(v, m):
    return ((v + m - 1) // m) * m


def model_forward(x, params, *, tile_s=None, vmem_budget_bytes=12 * 1024 * 1024):
    """x: (N, Cin, H, W) f32, params from prepare_weights -> (N, Cout, H-4, W-4)."""
    w1t, b1c, w2t, b2c = params
    N, Cin, H, W = x.shape
    Cmid = w1t.shape[0]
    Cout = w2t.shape[0]
    Ho, Wo = H - 4, W - 4          # two ConvTranspose2d(k=1,s=1,p=1) crops
    S = Ho * Wo

    # Crop the interior once (outside the per-grid-step path), flatten spatial
    # positions onto the lane axis.  Channels-major; only a slice + reshape.
    xs = x[:, :, 2:H - 2, 2:W - 2].reshape(N, Cin, S)

    # ---- spatial tile selection: VMEM-budget aware, multiple of 128 --------
    # Per-step footprint ~ 4B * tile_s * (2*(Cin+Cout) [double-buffered IO]
    #                                     + 2*Cmid      [h intermediate]).
    # 12 MiB budget keeps us under every generation's scoped-VMEM default
    # (v5e 16 MiB, v6e/v7x 32 MiB) without touching vmem_limit_bytes.
    bytes_per_s = 4 * (2 * (Cin + Cout) + 2 * Cmid)
    if tile_s is None:
        tile_s = min(8192, max(128, (vmem_budget_bytes // bytes_per_s) // 128 * 128))
    tile_s = min(tile_s, _round_up(S, 128))        # never exceed (padded) S
    tile_s = max(128, (tile_s // 128) * 128)       # keep a multiple of 128

    # v7x has two TensorCores; keep >= 2 "parallel" grid steps when possible.
    if N == 1:
        while pl.cdiv(S, tile_s) < 2 and tile_s > 128:
            tile_s = max(128, _round_up(tile_s // 2, 128))

    grid = (N, pl.cdiv(S, tile_s))

    cost = pl.CostEstimate(
        flops=2 * N * S * Cmid * (Cin + Cout),
        transcendentals=N * S * Cmid,
        bytes_accessed=4 * N * S * (Cin + Cout)
        + 4 * (Cin * Cmid + Cmid * Cout + Cmid + Cout),
    )

    out = pl.pallas_call(
        fused_kernel,
        out_shape=jax.ShapeDtypeStruct((N, Cout, S), jnp.float32),
        grid_spec=pltpu.PrefetchScalarGridSpec(
            num_scalar_prefetch=0,
            grid=grid,
            in_specs=[
                # batch dim squeezed out of the kernel view
                pl.BlockSpec((None, Cin, tile_s), lambda n, s: (n, 0, s)),
                pl.BlockSpec((Cmid, Cin), lambda n, s: (0, 0)),
                pl.BlockSpec((Cmid, 1), lambda n, s: (0, 0)),
                pl.BlockSpec((Cout, Cmid), lambda n, s: (0, 0)),
                pl.BlockSpec((Cout, 1), lambda n, s: (0, 0)),
            ],
            out_specs=pl.BlockSpec((None, Cout, tile_s), lambda n, s: (n, 0, s)),
        ),
        compiler_params=pltpu.CompilerParams(
            dimension_semantics=("parallel", "parallel")),
        cost_estimate=cost,
    )(xs, w1t, b1c, w2t, b2c)

    # Output is already channels-major; only a contiguous reshape remains.
    return out.reshape(N, Cout, Ho, Wo)


def reference_forward(x, w1, b1, w2, b2):
    # pure-JAX reference of the same math (NCHW)
    xi = x[:, :, 2:-2, 2:-2]
    h = jnp.einsum("nchw,cm->nmhw", xi, w1) + b1[None, :, None, None]
    h = jax.nn.sigmoid(h)
    y = jnp.einsum("nchw,cm->nmhw", h, w2) + b2[None, :, None, None]
    return y


if __name__ == "__main__":
    key = jax.random.PRNGKey(0)
    kx, k1, kb1, k2, kb2 = jax.random.split(key, 5)

    # Small shapes consistent with the module: N=2, Cin=3, spatial 26x26
    # (cropped spatial 22x22 -> S=484, exercising the masked ragged tail).
    N, Cin, H, W = 2, 3, 26, 26
    Cmid, Cout = 32, 32

    x = jax.random.normal(kx, (N, Cin, H, W), dtype=jnp.float32)

    # ConvTranspose2d weight (Cin, Cout, 1, 1) collapses to (Cin, Cout)
    w1 = jax.random.normal(k1, (Cin, Cmid), dtype=jnp.float32) * 0.2
    b1 = jax.random.normal(kb1, (Cmid,), dtype=jnp.float32) * 0.1
    w2 = jax.random.normal(k2, (Cmid, Cout), dtype=jnp.float32) * 0.2
    b2 = jax.random.normal(kb2, (Cout,), dtype=jnp.float32) * 0.1

    y_ref = reference_forward(x, w1, b1, w2, b2)

    # 1) f32 MXU operands (strict check; the right default on v5e).
    params_f32 = prepare_weights(w1, b1, w2, b2, mxu_dtype=jnp.float32)
    y = model_forward(x, params_f32)
    jax.block_until_ready(y)
    assert y.shape == (N, Cout, H - 4, W - 4)
    np.testing.assert_allclose(np.asarray(y), np.asarray(y_ref),
                               rtol=1e-5, atol=1e-5)

    # 2) bf16 MXU operands, f32 accumulation (v6e/v7x recommendation).
    params_bf16 = prepare_weights(w1, b1, w2, b2, mxu_dtype=jnp.bfloat16)
    y_bf = model_forward(x, params_bf16)
    jax.block_until_ready(y_bf)
    np.testing.assert_allclose(np.asarray(y_bf), np.asarray(y_ref),
                               rtol=0, atol=3e-2)

    print("KERNEL_OK")
</pallas_src>

<mosaic_0001>
module attributes {stable_mosaic.version = 11 : i64} {
  func.func @fused_kernel(%arg0: i32, %arg1: i32, %arg2: memref<1x3x512xf32, #tpu.memory_space<vmem>>, %arg3: memref<32x3xf32, #tpu.memory_space<vmem>>, %arg4: memref<32x1xf32, #tpu.memory_space<vmem>>, %arg5: memref<32x32xf32, #tpu.memory_space<vmem>>, %arg6: memref<32x1xf32, #tpu.memory_space<vmem>>, %arg7: memref<1x32x512xf32, #tpu.memory_space<vmem>>) attributes {dimension_semantics = [#tpu.dimension_semantics<parallel>, #tpu.dimension_semantics<parallel>], iteration_bounds = array<i64: 2, 1>, scalar_prefetch = 0 : i64, scratch_operands = 0 : i64, tpu.core_type = #tpu.core_type<tc>, window_params = [{transform_indices = @transform_0, window_bounds = array<i64: 1, 3, 512>}, {pipeline_mode = #tpu.pipeline_mode<synchronous>, transform_indices = @transform_1, window_bounds = array<i64: 32, 3>}, {pipeline_mode = #tpu.pipeline_mode<synchronous>, transform_indices = @transform_2, window_bounds = array<i64: 32, 1>}, {pipeline_mode = #tpu.pipeline_mode<synchronous>, transform_indices = @transform_3, window_bounds = array<i64: 32, 32>}, {pipeline_mode = #tpu.pipeline_mode<synchronous>, transform_indices = @transform_4, window_bounds = array<i64: 32, 1>}, {transform_indices = @transform_5, window_bounds = array<i64: 1, 32, 512>}]} {
    %c0 = arith.constant 0 : index
    %c0_0 = arith.constant 0 : index
    %c0_1 = arith.constant 0 : index
    %0 = vector.load %arg2[%c0, %c0_0, %c0_1] : memref<1x3x512xf32, #tpu.memory_space<vmem>>, vector<1x3x512xf32>
    %1 = vector.shape_cast %0 : vector<1x3x512xf32> to vector<3x512xf32>
    %c0_2 = arith.constant 0 : index
    %c0_3 = arith.constant 0 : index
    %2 = vector.load %arg3[%c0_2, %c0_3] : memref<32x3xf32, #tpu.memory_space<vmem>>, vector<32x3xf32>
    %3 = vector.extract_strided_slice %2 {offsets = [0, 0], sizes = [32, 1], strides = [1, 1]} : vector<32x3xf32> to vector<32x1xf32>
    %4 = vector.extract_strided_slice %1 {offsets = [0, 0], sizes = [1, 512], strides = [1, 1]} : vector<3x512xf32> to vector<1x512xf32>
    %5 = vector.broadcast %3 : vector<32x1xf32> to vector<32x512xf32>
    %6 = vector.broadcast %4 : vector<1x512xf32> to vector<32x512xf32>
    %7 = arith.mulf %5, %6 : vector<32x512xf32>
    %8 = vector.extract_strided_slice %2 {offsets = [0, 1], sizes = [32, 1], strides = [1, 1]} : vector<32x3xf32> to vector<32x1xf32>
    %9 = vector.extract_strided_slice %1 {offsets = [1, 0], sizes = [1, 512], strides = [1, 1]} : vector<3x512xf32> to vector<1x512xf32>
    %10 = vector.broadcast %8 : vector<32x1xf32> to vector<32x512xf32>
    %11 = vector.broadcast %9 : vector<1x512xf32> to vector<32x512xf32>
    %12 = arith.mulf %10, %11 : vector<32x512xf32>
    %13 = arith.addf %7, %12 : vector<32x512xf32>
    %14 = vector.extract_strided_slice %2 {offsets = [0, 2], sizes = [32, 1], strides = [1, 1]} : vector<32x3xf32> to vector<32x1xf32>
    %15 = vector.extract_strided_slice %1 {offsets = [2, 0], sizes = [1, 512], strides = [1, 1]} : vector<3x512xf32> to vector<1x512xf32>
    %16 = vector.broadcast %14 : vector<32x1xf32> to vector<32x512xf32>
    %17 = vector.broadcast %15 : vector<1x512xf32> to vector<32x512xf32>
    %18 = arith.mulf %16, %17 : vector<32x512xf32>
    %19 = arith.addf %13, %18 : vector<32x512xf32>
    %c0_4 = arith.constant 0 : index
    %c0_5 = arith.constant 0 : index
    %20 = vector.load %arg4[%c0_4, %c0_5] : memref<32x1xf32, #tpu.memory_space<vmem>>, vector<32x1xf32>
    %21 = vector.broadcast %20 : vector<32x1xf32> to vector<32x512xf32>
    %22 = arith.addf %19, %21 : vector<32x512xf32>
    %23 = arith.negf %22 : vector<32x512xf32>
    %24 = math.exp %23 : vector<32x512xf32>
    %cst = arith.constant 1.000000e+00 : f32
    %25 = vector.broadcast %cst : f32 to vector<32x512xf32>
    %26 = arith.addf %25, %24 : vector<32x512xf32>
    %27 = arith.divf %25, %26 : vector<32x512xf32>
    %c0_6 = arith.constant 0 : index
    %c0_7 = arith.constant 0 : index
    %28 = vector.load %arg5[%c0_6, %c0_7] : memref<32x32xf32, #tpu.memory_space<vmem>>, vector<32x32xf32>
    %cst_8 = arith.constant dense<0.000000e+00> : vector<32x512xf32>
    %29 = tpu.matmul %28, %27, %cst_8 {dimension_numbers = #tpu.dot_dimension_numbers<[1], [0], [0], [1], [0, 0, 1, 1], [], []>} : vector<32x32xf32>, vector<32x512xf32>, vector<32x512xf32> -> vector<32x512xf32>
    %c0_9 = arith.constant 0 : index
    %c0_10 = arith.constant 0 : index
    %30 = vector.load %arg6[%c0_9, %c0_10] : memref<32x1xf32, #tpu.memory_space<vmem>>, vector<32x1xf32>
    %31 = vector.broadcast %30 : vector<32x1xf32> to vector<32x512xf32>
    %32 = arith.addf %29, %31 : vector<32x512xf32>
    %c0_11 = arith.constant 0 : index
    %c0_12 = arith.constant 0 : index
    %c0_13 = arith.constant 0 : index
    %33 = vector.load %arg7[%c0_11, %c0_12, %c0_13] : memref<1x32x512xf32, #tpu.memory_space<vmem>>, vector<1x32x512xf32>
    %34 = vector.shape_cast %33 : vector<1x32x512xf32> to vector<32x512xf32>
    %35 = vector.shape_cast %32 : vector<32x512xf32> to vector<1x32x512xf32>
    tpu.vector_store %arg7[%c0_11, %c0_12, %c0_13], %35 {strides = array<i32>} : memref<1x32x512xf32, #tpu.memory_space<vmem>>, vector<1x32x512xf32>,
    return
  }
  func.func @transform_0(%arg0: i32, %arg1: i32) -> (i32, i32, i32) {
    %c0_i32 = arith.constant 0 : i32
    %c0_i32_0 = arith.constant 0 : i32
    return %arg0, %c0_i32, %arg1 : i32, i32, i32
  }
  func.func @transform_1(%arg0: i32, %arg1: i32) -> (i32, i32) {
    %c0_i32 = arith.constant 0 : i32
    %c0_i32_0 = arith.constant 0 : i32
    %c0_i32_1 = arith.constant 0 : i32
    return %c0_i32, %c0_i32_0 : i32, i32
  }
  func.func @transform_2(%arg0: i32, %arg1: i32) -> (i32, i32) {
    %c0_i32 = arith.constant 0 : i32
    %c0_i32_0 = arith.constant 0 : i32
    %c0_i32_1 = arith.constant 0 : i32
    return %c0_i32, %c0_i32_0 : i32, i32
  }
  func.func @transform_3(%arg0: i32, %arg1: i32) -> (i32, i32) {
    %c0_i32 = arith.constant 0 : i32
    %c0_i32_0 = arith.constant 0 : i32
    %c0_i32_1 = arith.constant 0 : i32
    return %c0_i32, %c0_i32_0 : i32, i32
  }
  func.func @transform_4(%arg0: i32, %arg1: i32) -> (i32, i32) {
    %c0_i32 = arith.constant 0 : i32
    %c0_i32_0 = arith.constant 0 : i32
    %c0_i32_1 = arith.constant 0 : i32
    return %c0_i32, %c0_i32_0 : i32, i32
  }
  func.func @transform_5(%arg0: i32, %arg1: i32) -> (i32, i32, i32) {
    %c0_i32 = arith.constant 0 : i32
    %c0_i32_0 = arith.constant 0 : i32
    return %arg0, %c0_i32, %arg1 : i32, i32, i32
  }
}

</mosaic_0001>

<bundles_post_ra>
// kernel: tpu_custom_call.1
= control target key start
LH: loop header
LB: loop body
LE: loop exit
PB: predicated region body
PF: predicated region fallthrough
CT: control target
= control target key end

     0   :  { %10 = vsyncpa [#allocation3], 0  ;;  %s1565_s0 = inlined_call_operand.vmem [shape: f32[2,3,484], index: 0, kind: input, shape index: {}]   ;;  %s1566_s1 = inlined_call_operand.vmem [shape: f32[32,3], index: 1, kind: input, shape index: {}]   ;;  %s1567_s2 = inlined_call_operand.vmem [shape: f32[32,1], index: 2, kind: input, shape index: {}]   ;;  %s1568_s3 = inlined_call_operand.vmem [shape: f32[32,32], index: 3, kind: input, shape index: {}]   ;;  %s1569_s4 = inlined_call_operand.vmem [shape: f32[32,1], index: 4, kind: input, shape index: {}]   ;;  %s1570_s5 = inlined_call_operand.hbm [shape: f32[2,32,484], index: 5, kind: output, shape index: {}]  }
   0x1   :  { %12 = vsyncpa [#allocation3 + $0x1], 0  ;;  %s1273_s18 = smov 0   ;;  %s1275_s19 = smov 0  }
   0x2   :  { %s1277_s20 = smov 0   ;;  %s1279_s21 = smov 0  }
   0x3   :  { %s1281_s22 = smov 0   ;;  %s1283_s23 = smov 0  }
   0x4 LB: > { %s968_s24 = sadd.s32 4294967295, %s1234_s23   ;;  %s969_s25 = sadd.s32 4294967294, %s1234_s23   ;;  %s1234_s23 = sphi %s1283_s23, %s18_s23   ;;  %s1230_s22 = sphi %s1281_s22, %s1577_s22   ;;  %s1226_s21 = sphi %s1279_s21, %s1576_s21   ;;  %s1222_s20 = sphi %s1277_s20, %s1575_s20   ;;  %s1218_s19 = sphi %s1275_s19, %s1574_s19   ;;  %s1214_s18 = sphi %s1273_s18, %s1573_s18  }
   0x5   : > { %s30_s26 = sadd.s32 1, %s1230_s22  ;;  %s151_s27 = sadd.s32 1, %s1222_s20 }
   0x6   : > { %p32_p0 = scmp.ge.s32.totalorder %s30_s26, 2  ;;  %p161_p1 = scmp.ne.s32.totalorder %s1222_s20, %s1218_s19 }
   0x7   : > { %p162_p2 = scmp.eq.s32.totalorder %s968_s24, 1  ;;  %p167_p3 = scmp.ne.s32.totalorder %s1218_s19, %s1214_s18 }
   0x8   : > { %s1579_s26 = smov (%p32_p0, %s30_s26), 0  ;;  %p168_p5 = scmp.eq.s32.totalorder %s969_s25, 1 }
   0x9   : > { %p1313_p4 = por %p162_p2, %p161_p1  ;;  %s146_s29 = ssub.s32 %s1230_s22, %s1579_s26 }
   0xa   : > { %p972_p6 = scmp.ge.s32.totalorder %s1234_s23, 1  ;;  %p149_p7 = scmp.eq.s32.totalorder %s146_s29, 0 }
   0xb   : > { %p1320_p8 = por %p168_p5, %p167_p3  ;;  %p211_p9 = scmp.lt.s32.totalorder %s1234_s23, 3 }
   0xc   : > { %s1326_s6 = scalar_select %p149_p7, %s1222_s20, %s151_s27  }
   0xd   : > { %p212_p10 = pnand %p972_p6, %p211_p9 }
   0xe   : > { %v256_v0 = vld [vmem:[%s1566_s1] sm:$0xff] (!%p212_p10)  ;;  %v1236_v1 = vmov (!%p212_p10), 2   ;;  %v1237_v2 = vmov (!%p212_p10), 1   ;;  %v258_v3 = vld [vmem:[%s1566_s1 + $0x10] sm:$0xff] (!%p212_p10)  ;;  %v257_v4 = vld [vmem:[%s1566_s1 + $0x8] sm:$0xff] (!%p212_p10)  ;;  %v1238_v5 = vmov (!%p212_p10), 0   ;;  %v282_v16 = vlaneseq (!%p212_p10) }
   0xf   : > { %215 = sbr.rel (%p212_p10) target bundleno = 470 (0x1d6), region = 40  ;;  %1085 = vset.pattern.permute.xlu0 (!%p212_p10), %v1236_v1  ;;  %1084 = vset.pattern.permute.xlu1 (!%p212_p10), %v1237_v2  ;;  %v259_v6 = vld [vmem:[%s1566_s1 + $0x18] sm:$0xff] (!%p212_p10)  ;;  %v503_v7 = vld [vmem:[%s1567_s2 + $0x8] sm:$0xff] (!%p212_p10)  ;;  %v642_v8 = vld [vmem:[%s1569_s4] sm:$0xff] (!%p212_p10)  ;;  %v1239_v15 = vmov (!%p212_p10), 0.0   ;;  %p244_p11 = scmp.lt.s32.totalorder (!%p212_p10), %s1226_s21, 1 }
  0x10   : > { %419 = vperm.xlu0 (!%p212_p10), %1085, %v256_v0   ;;  %335 = vperm.xlu1 (!%p212_p10), %1084, %v256_v0   ;;  %v644_v9 = vld [vmem:[%s1569_s4 + $0x10] sm:$0xff] (!%p212_p10)  ;;  %v502_v10 = vld [vmem:[%s1567_s2] sm:$0xff] (!%p212_p10)  ;;  %v505_v12 = vld [vmem:[%s1567_s2 + $0x18] sm:$0xff] (!%p212_p10)  ;;  %v283_v17 = vshrl.u32 (!%p212_p10), %v282_v16, 7  ;;  %vm666_vm0 = vcmask (!%p212_p10), 261120   ;;  %s240_s14 = sand.u32 (!%p212_p10), 1, %s1218_s19  }
  0x11   : > { %v504_v11 = vld [vmem:[%s1567_s2 + $0x10] sm:$0xff] (!%p212_p10)  ;;  %v643_v13 = vld [vmem:[%s1569_s4 + $0x8] sm:$0xff] (!%p212_p10)  ;;  %v645_v14 = vld [vmem:[%s1569_s4 + $0x18] sm:$0xff] (!%p212_p10)  ;;  %743 = vmatprep.mubr.f32.mxu0 (!%p212_p10), %v1239_v15  ;;  %832 = vmatprep.mubr.f32.mxu1 (!%p212_p10), %v1239_v15  ;;  %s973_s15 = sshll.u32 (!%p212_p10), %s240_s14, 7  ;;  %s1240_s8 = smov (!%p212_p10), [#allocation2]  }
  0x12   : > { %v352_v20 = vsub.s32 (!%p212_p10), 1, %v283_v17  ;;  %v356_v21 = vsub.s32 (!%p212_p10), 5, %v283_v17  ;;  %v284_v25 = vsub.s32 (!%p212_p10), 0, %v283_v17  ;;  %v288_v26 = vsub.s32 (!%p212_p10), 4, %v283_v17  ;;  %s1160_s9 = sshll.u32 (!%p212_p10), %s1240_s8, 4  ;;  %s1161_s9 = int_to_ptr.vmem [resolvable:$false] %s1160_s9 }
  0x13   : > { %v436_v27 = vsub.s32 (!%p212_p10), 2, %v283_v17  ;;  %v440_v29 = vsub.s32 (!%p212_p10), 6, %v283_v17  ;;  %s1162_s10 = scalar_lea.vmem (!%p212_p10), %s1161_s9, 4096 }
  0x14   : > { %427 = vperm.xlu0 (!%p212_p10), %1085, %v258_v3   ;;  %339 = vperm.xlu1 (!%p212_p10), %1084, %v257_v4  }
  0x16   : > { %s245_s16 = scalar_select %p244_p11, %s1226_s21, 1 }
  0x18   : > { %1089 = vset.pattern.permute.xlu0 %v1238_v5  ;;  %1086 = vset.pattern.permute.xlu1 %v1236_v1  ;;  %s1005_s17 = sshll.u32 %s245_s16, 4  ;;  %s1490_s16 = scalar_lea.vmem [#allocation2], %s973_s15 }
  0x19   : > { %262 = vperm.xlu0 %1089, %v256_v0   ;;  %423 = vperm.xlu1 %1086, %v257_v4   ;;  %s251_s27 = scalar_lea.vmem %s1565_s0, %s1005_s17  ;;  %s1006_s17 = sshll.u32 %s1226_s21, 11 }
  0x1a   : > { %v254_v22 = vld [vmem:[%s251_s27] sm:$0x77]  ;;  %v255_v28 = vld [vmem:[%s251_s27 + $0x8] sm:$0x77]  ;;  %s889_s24 = sshll.u32 %s1490_s16, 4  ;;  %s1510_s29 = scalar_lea.hbm %s1570_s5, %s1006_s17  ;;  %s1512_s24 = int_to_ptr.vmem [resolvable:$true] %s889_s24 }
  0x1b   : > { %v353_v30 = vrot.slane %v254_v22, %v352_v20  ;;  %v357_v31 = vrot.slane %v254_v22, %v356_v21  ;;  %v285_v32 = vrot.slane %v254_v22, %v284_v25  ;;  %v289_v33 = vrot.slane %v254_v22, %v288_v26  ;;  %s1519_s21 = scalar_lea.sflag [#allocation3], %s240_s14  ;;  %s1156_s7 = scalar_lea.vmem %s1512_s24, 2048 }
  0x1c   : > { %v293_v34 = vrot.slane %v255_v28, %v284_v25  ;;  %v361_v35 = vrot.slane %v255_v28, %v352_v20  ;;  %v365_v36 = vrot.slane %v255_v28, %v356_v21  ;;  %v437_v37 = vrot.slane %v254_v22, %v436_v27  ;;  %p1157_p12 = scmp.ne.s32.totalorder %s1512_s24, %s1156_s7  ;;  %p1163_p1 = scmp.lt.s32.totalorder %s1512_s24, %s1161_s9 }
  0x1d   : > { %267 = vperm.xlu0 %1089, %v257_v4   ;;  %1087 = vset.pattern.permute.xlu1 %v1238_v5  ;;  %v441_v40 = vrot.slane %v254_v22, %v440_v29  ;;  %v1373_v41 = vrot.slane %v353_v30, %v352_v20  ;;  %v445_v42 = vrot.slane %v255_v28, %v436_v27  ;;  %p1164_p2 = scmp.lt.s32.totalorder %s1162_s10, %s1156_s7 }
  0x1e   : > { %272 = vperm.xlu1 %1087, %v258_v3   ;;  %v449_v43 = vrot.slane %v255_v28, %v440_v29  ;;  %v1375_v44 = vrot.slane %v357_v31, %v352_v20  ;;  %v1377_v45 = vrot.slane %v285_v32, %v284_v25  ;;  %v1379_v46 = vrot.slane %v289_v33, %v284_v25  ;;  %p1158_p13 = pnand %p1157_p12, %p1313_p4 }
  0x1f   : > { %v1381_v47 = vrot.slane %v293_v34, %v284_v25  ;;  %v1383_v48 = vrot.slane %v361_v35, %v352_v20  ;;  %v1385_v49 = vrot.slane %v365_v36, %v352_v20  ;;  %v1387_v50 = vrot.slane %v437_v37, %v436_v27  ;;  %p1165_p3 = por %p1164_p2, %p1163_p1 }
  0x20   : > { %v297_v51 = vrot.slane %v255_v28, %v288_v26  ;;  %v1389_v53 = vrot.slane %v441_v40, %v436_v27  ;;  %v1396_v58 = vrot.slane %v445_v42, %v436_v27  ;;  %v1401_v62 = vrot.slane %v449_v43, %v436_v27  ;;  %p1159_p0 = pneg %p1158_p13 }
  0x21   : > { %277 = vperm.xlu0 %1089, %v259_v6  }
  0x22   : > { %1088 = vset.pattern.permute.xlu1 %v1237_v2  ;;  %v1403_v63 = vrot.slane %v297_v51, %v284_v25  ;;  %p1166_p5 = pnand %p1165_p3, %p1159_p0 }
  0x23   : > { %343 = vperm.xlu1 %1088, %v258_v3  }
  0x25   : > { %513 = vperm.xlu0 %1089, %v503_v7  }
  0x27   : > { %347 = vperm.xlu1 %1088, %v259_v6  }
  0x29   : > { %648 = vperm.xlu0 %1089, %v642_v8  }
  0x2b   : > { %1090 = vset.pattern.permute.xlu1 %v1236_v1 }
  0x2c   : > { %431 = vperm.xlu1 %1090, %v259_v6  }
  0x2d   : > { %658 = vperm.xlu0 %1089, %v644_v9  }
  0x30   : > { %1091 = vset.pattern.permute.xlu1 %v1238_v5 }
  0x31   : > { %508 = vperm.xlu1 %1091, %v502_v10  }
  0x35   : > { %518 = vperm.xlu1 %1091, %v504_v11  }
  0x39   : > { %523 = vperm.xlu1 %1091, %v505_v12  }
  0x3d   : > { %653 = vperm.xlu1 %1091, %v643_v13  }
  0x41   : > { %663 = vperm.xlu1 %1091, %v645_v14  }
  0x8f   : > { %v336_v18 = vpop.permute.xlu1 %335  ;;  %v420_v19 = vpop.permute.xlu0 %419 }
  0x90   : > { %v386_v4 = vmul.f32 %v1373_v41, %v336_v18  ;;  %v387_v5 = vmul.f32 %v1375_v44, %v336_v18  ;;  %v388_v6 = vmul.f32 %v1383_v48, %v336_v18  ;;  %v389_v7 = vmul.f32 %v1385_v49, %v336_v18 }
  0x91   : > { %v470_v13 = vmul.f32 %v1387_v50, %v420_v19  ;;  %v471_v14 = vmul.f32 %v1389_v53, %v420_v19  ;;  %v472_v16 = vmul.f32 %v1396_v58, %v420_v19  ;;  %v473_v17 = vmul.f32 %v1401_v62, %v420_v19 }
  0x93   : > { %v340_v23 = vpop.permute.xlu1 %339  ;;  %v1371_v24 = vpop.permute.xlu0 %427 }
  0x94   : > { %v390_v59 = vmul.f32 %v1373_v41, %v340_v23  ;;  %v391_v60 = vmul.f32 %v1375_v44, %v340_v23  ;;  %v392_v61 = vmul.f32 %v1383_v48, %v340_v23  ;;  %v393_v20 = vmul.f32 %v1385_v49, %v340_v23 }
  0x95   : > { %v478_v19 = vmul.f32 %v1387_v50, %v1371_v24  ;;  %v479_v23 = vmul.f32 %v1389_v53, %v1371_v24  ;;  %v480_v35 = vmul.f32 %v1396_v58, %v1371_v24  ;;  %v481_v36 = vmul.f32 %v1401_v62, %v1371_v24 }
  0x98   : > { %v263_v38 = vpop.permute.xlu0 %262  ;;  %v424_v39 = vpop.permute.xlu1 %423 }
  0x99   : > { %v474_v8 = vmul.f32 %v1387_v50, %v424_v39  ;;  %v475_v9 = vmul.f32 %v1389_v53, %v424_v39  ;;  %v476_v10 = vmul.f32 %v1396_v58, %v424_v39  ;;  %v318_v26 = vmul.f32 %v1377_v45, %v263_v38 }
  0x9a   : > { %v319_v27 = vmul.f32 %v1379_v46, %v263_v38  ;;  %v320_v28 = vmul.f32 %v1381_v47, %v263_v38  ;;  %v321_v29 = vmul.f32 %v1403_v63, %v263_v38  ;;  %v477_v37 = vmul.f32 %v1401_v62, %v424_v39 }
  0x9b   : > { %v402_v43 = vadd.f32 %v386_v4, %v318_v26 }
  0x9c   : > { %v268_v52 = vpop.permute.xlu0 %267  ;;  %v403_v51 = vadd.f32 %v387_v5, %v319_v27 }
  0x9d   : > { %v322_v54 = vmul.f32 %v1377_v45, %v268_v52  ;;  %v323_v55 = vmul.f32 %v1379_v46, %v268_v52  ;;  %v324_v56 = vmul.f32 %v1381_v47, %v268_v52  ;;  %v1394_v57 = vpop.permute.xlu1 %272  ;;  %v325_v11 = vmul.f32 %v1403_v63, %v268_v52 }
  0x9e   : > { %v404_v52 = vadd.f32 %v388_v6, %v320_v28  ;;  %v327_v24 = vmul.f32 %v1379_v46, %v1394_v57  ;;  %v328_v39 = vmul.f32 %v1381_v47, %v1394_v57  ;;  %v329_v4 = vmul.f32 %v1403_v63, %v1394_v57 }
  0x9f   : > { %v406_v0 = vadd.f32 %v390_v59, %v322_v54  ;;  %v407_v1 = vadd.f32 %v391_v60, %v323_v55  ;;  %v408_v2 = vadd.f32 %v392_v61, %v324_v56  ;;  %v409_v30 = vadd.f32 %v393_v20, %v325_v11 }
  0xa0   : > { %v1405_v3 = vpop.permute.xlu0 %277  ;;  %v405_v54 = vadd.f32 %v389_v7, %v321_v29  ;;  %v326_v60 = vmul.f32 %v1377_v45, %v1394_v57  ;;  %v486_v7 = vadd.f32 %v470_v13, %v402_v43  ;;  %v487_v20 = vadd.f32 %v471_v14, %v403_v51 }
  0xa1   : > { %v490_v21 = vadd.f32 %v474_v8, %v406_v0  ;;  %v491_v22 = vadd.f32 %v475_v9, %v407_v1  ;;  %v492_v25 = vadd.f32 %v476_v10, %v408_v2  ;;  %v493_v59 = vadd.f32 %v477_v37, %v409_v30 }
  0xa2   : > { %v344_v12 = vpop.permute.xlu1 %343  ;;  %v330_v5 = vmul.f32 %v1377_v45, %v1405_v3  ;;  %v331_v6 = vmul.f32 %v1379_v46, %v1405_v3  ;;  %v333_v57 = vmul.f32 %v1403_v63, %v1405_v3 }
  0xa3   : > { %v394_v55 = vmul.f32 %v1373_v41, %v344_v12  ;;  %v395_v56 = vmul.f32 %v1375_v44, %v344_v12  ;;  %v396_v0 = vmul.f32 %v1383_v48, %v344_v12  ;;  %v397_v1 = vmul.f32 %v1385_v49, %v344_v12 }
  0xa4   : > { %v514_v18 = vpop.permute.xlu0 %513  ;;  %v332_v12 = vmul.f32 %v1381_v47, %v1405_v3 }
  0xa5   : > { %v530_v31 = vadd.f32 %v514_v18, %v490_v21  ;;  %v531_v32 = vadd.f32 %v514_v18, %v491_v22  ;;  %v532_v33 = vadd.f32 %v514_v18, %v492_v25  ;;  %v533_v2 = vadd.f32 %v514_v18, %v493_v59 }
  0xa6   : > { %v348_v34 = vpop.permute.xlu1 %347  ;;  %v410_v8 = vadd.f32 %v394_v55, %v326_v60  ;;  %v411_v9 = vadd.f32 %v395_v56, %v327_v24  ;;  %v488_v18 = vadd.f32 %v472_v16, %v404_v52  ;;  %v489_v21 = vadd.f32 %v473_v17, %v405_v54 }
  0xa7   : > { %v980_v38 = vmul.f32 -1.442695, %v530_v31  ;;  %v981_v40 = vmul.f32 -1.442695, %v531_v32  ;;  %v982_v42 = vmul.f32 -1.442695, %v532_v33  ;;  %v398_v10 = vmul.f32 %v1373_v41, %v348_v34 }
  0xa8   : > { %v399_v11 = vmul.f32 %v1375_v44, %v348_v34  ;;  %v412_v45 = vadd.f32 %v396_v0, %v328_v39  ;;  %v413_v22 = vadd.f32 %v397_v1, %v329_v4  ;;  %v983_v25 = vmul.f32 -1.442695, %v533_v2 }
  0xa9   : > { %1092 = vpow2.f32 %v980_v38  ;;  %v400_v13 = vmul.f32 %v1383_v48, %v348_v34  ;;  %v401_v26 = vmul.f32 %v1385_v49, %v348_v34  ;;  %v414_v44 = vadd.f32 %v398_v10, %v330_v5 }
  0xaa   : > { %1094 = vpow2.f32 %v981_v40  ;;  %v415_v28 = vadd.f32 %v399_v11, %v331_v6  ;;  %v494_v29 = vadd.f32 %v478_v19, %v410_v8  ;;  %v495_v47 = vadd.f32 %v479_v23, %v411_v9 }
  0xab   : > { %v432_v61 = vpop.permute.xlu1 %431  ;;  %1096 = vpow2.f32 %v982_v42  ;;  %v496_v32 = vadd.f32 %v480_v35, %v412_v45  ;;  %v497_v33 = vadd.f32 %v481_v36, %v413_v22  ;;  %v417_v59 = vadd.f32 %v401_v26, %v333_v57 }
  0xac   : > { %v482_v14 = vmul.f32 %v1387_v50, %v432_v61  ;;  %1098 = vpow2.f32 %v983_v25  ;;  %v483_v49 = vmul.f32 %v1389_v53, %v432_v61  ;;  %v484_v23 = vmul.f32 %v1396_v58, %v432_v61 }
  0xad   : > { %v485_v35 = vmul.f32 %v1401_v62, %v432_v61  ;;  %v416_v53 = vadd.f32 %v400_v13, %v332_v12 }
  0xae   : > { %v498_v51 = vadd.f32 %v482_v14, %v414_v44  ;;  %v499_v58 = vadd.f32 %v483_v49, %v415_v28 }
  0xaf   : > { %v500_v39 = vadd.f32 %v484_v23, %v416_v53  ;;  %v501_v1 = vadd.f32 %v485_v35, %v417_v59 }
  0xb0   : > { %v509_v46 = vpop.permute.xlu1 %508 }
  0xb1   : > { %v526_v41 = vadd.f32 %v509_v46, %v486_v7  ;;  %v527_v27 = vadd.f32 %v509_v46, %v487_v20  ;;  %v528_v16 = vadd.f32 %v509_v46, %v488_v18  ;;  %v529_v3 = vadd.f32 %v509_v46, %v489_v21 }
  0xb3   : > { %v976_v17 = vmul.f32 -1.442695, %v526_v41  ;;  %v977_v30 = vmul.f32 -1.442695, %v527_v27  ;;  %v1093_v63 = vpop.eup %1092  ;;  %v978_v42 = vmul.f32 -1.442695, %v528_v16 }
  0xb4   : > { %v519_v31 = vpop.permute.xlu1 %518  ;;  %v1095_v48 = vpop.eup %1094  ;;  %v594_v37 = vadd.f32 1.0, %v1093_v63  ;;  %v979_v36 = vmul.f32 -1.442695, %v529_v3 }
  0xb5   : > { %1100 = vpow2.f32 %v976_v17  ;;  %v534_v34 = vadd.f32 %v519_v31, %v494_v29  ;;  %v1097_v38 = vpop.eup %1096  ;;  %v595_v19 = vadd.f32 1.0, %v1095_v48  ;;  %v535_v50 = vadd.f32 %v519_v31, %v495_v47 }
  0xb6   : > { %1102 = vpow2.f32 %v977_v30  ;;  %v596_v40 = vadd.f32 1.0, %v1097_v38  ;;  %v536_v43 = vadd.f32 %v519_v31, %v496_v32  ;;  %v537_v52 = vadd.f32 %v519_v31, %v497_v33  ;;  %v1099_v4 = vpop.eup %1098 }
  0xb7   : > { %1104 = vrcp.f32 %v594_v37  ;;  %v984_v55 = vmul.f32 -1.442695, %v534_v34  ;;  %v985_v60 = vmul.f32 -1.442695, %v535_v50  ;;  %v597_v21 = vadd.f32 1.0, %v1099_v4 }
  0xb8   : > { %v524_v54 = vpop.permute.xlu1 %523  ;;  %1106 = vrcp.f32 %v595_v19  ;;  %v986_v24 = vmul.f32 -1.442695, %v536_v43  ;;  %v987_v0 = vmul.f32 -1.442695, %v537_v52 }
  0xb9   : > { %v538_v56 = vadd.f32 %v524_v54, %v498_v51  ;;  %1108 = vrcp.f32 %v596_v40  ;;  %v539_v2 = vadd.f32 %v524_v54, %v499_v58  ;;  %v540_v62 = vadd.f32 %v524_v54, %v500_v39  ;;  %v639_v58 = vld [vmem:[%s1568_s3 + $0x8] sm:$0xff]  ;;  %v641_v39 = vld [vmem:[%s1568_s3 + $0x18] sm:$0xff] }
  0xba   : > { %1110 = vpow2.f32 %v978_v42  ;;  %v541_v5 = vadd.f32 %v524_v54, %v501_v1 }
  0xbb   : > { %1112 = vpow2.f32 %v979_v36  ;;  %v988_v61 = vmul.f32 -1.442695, %v538_v56  ;;  %v989_v9 = vmul.f32 -1.442695, %v539_v2  ;;  %v990_v11 = vmul.f32 -1.442695, %v540_v62 }
  0xbc   : > { %1114 = vpow2.f32 %v984_v55  ;;  %v991_v20 = vmul.f32 -1.442695, %v541_v5 }
  0xbd   : > { %1116 = vpow2.f32 %v985_v60  ;;  %v638_v60 = vld [vmem:[%s1568_s3] sm:$0xff] }
  0xbe   : > { %1118 = vpow2.f32 %v986_v24  ;;  %v640_v24 = vld [vmem:[%s1568_s3 + $0x10] sm:$0xff] }
  0xbf   : > { %v1101_v6 = vpop.eup %1100  ;;  %1120 = vpow2.f32 %v987_v0  ;;  %v649_v0 = vpop.permute.xlu0 %648 }
  0xc0   : > { %v1103_v7 = vpop.eup %1102  ;;  %v590_v8 = vadd.f32 1.0, %v1101_v6  ;;  %1122 = vpow2.f32 %v988_v61  ;;  %v654_v6 = vpop.permute.xlu1 %653 }
  0xc1   : > { %v591_v10 = vadd.f32 1.0, %v1103_v7  ;;  %v1105_v12 = vpop.eup %1104 }
  0xc2   : > { %1124 = vrcp.f32 %v590_v8  ;;  %v1107_v18 = vpop.eup %1106 }
  0xc3   : > { %1126 = vrcp.f32 %v591_v10  ;;  %v1109_v57 = vpop.eup %1108 }
  0xc4   : > { %1128 = vpow2.f32 %v989_v9  ;;  %v1111_v45 = vpop.eup %1110 }
  0xc5   : > { %1130 = vpow2.f32 %v990_v11  ;;  %v1113_v22 = vpop.eup %1112  ;;  %v592_v25 = vadd.f32 1.0, %v1111_v45 }
  0xc6   : > { %1132 = vpow2.f32 %v991_v20  ;;  %v1115_v46 = vpop.eup %1114  ;;  %v593_v13 = vadd.f32 1.0, %v1113_v22 }
  0xc7   : > { %1134 = vrcp.f32 %v597_v21  ;;  %v1117_v26 = vpop.eup %1116  ;;  %v598_v41 = vadd.f32 1.0, %v1115_v46  ;;  %v659_v21 = vpop.permute.xlu0 %658 }
  0xc8   : > { %1136 = vrcp.f32 %v592_v25  ;;  %v1119_v27 = vpop.eup %1118  ;;  %v599_v44 = vadd.f32 1.0, %v1117_v26 }
  0xc9   : > { %1138 = vrcp.f32 %v593_v13  ;;  %v1121_v28 = vpop.eup %1120  ;;  %v600_v47 = vadd.f32 1.0, %v1119_v27  ;;  %v664_v27 = vpop.permute.xlu1 %663 }
  0xca   : > { %v1123_v29 = vpop.eup %1122  ;;  %v601_v16 = vadd.f32 1.0, %v1121_v28  ;;  %1140 = vrcp.f32 %v598_v41 }
  0xcb   : > { %v602_v17 = vadd.f32 1.0, %v1123_v29  ;;  %1142 = vrcp.f32 %v599_v44 }
  0xcc   : > { %v1125_v14 = vpop.eup %1124 }
  0xcd   : > { %v1127_v30 = vpop.eup %1126  ;;  %v1009_v63 = vpack.c.bf16 %v1105_v12, %v1125_v14  ;;  %1144 = vrcp.f32 %v602_v17 }
  0xce   : > { %v1129_v3 = vpop.eup %1128  ;;  %v1007_v31 = vpack.c.bf16 %v1107_v18, %v1127_v30  ;;  %1146 = vrcp.f32 %v600_v47 }
  0xcf   : > { %v1131_v32 = vpop.eup %1130  ;;  %v603_v33 = vadd.f32 1.0, %v1129_v3  ;;  %1148 = vrcp.f32 %v601_v16 }
  0xd0   : > { %v1133_v48 = vpop.eup %1132  ;;  %v604_v37 = vadd.f32 1.0, %v1131_v32  ;;  %1008 = vmatprep.subr.bf16.mxu0 %v1007_v31 }
  0xd1   : > { %v1135_v49 = vpop.eup %1134  ;;  %v605_v34 = vadd.f32 1.0, %v1133_v48  ;;  %1150 = vrcp.f32 %v603_v33  ;;  %1010 = vmatpush1.bf16.msra.mxu0 %v1009_v63 }
  0xd2   : > { %v1137_v38 = vpop.eup %1136  ;;  %1152 = vrcp.f32 %v604_v37 }
  0xd3   : > { %v1139_v19 = vpop.eup %1138  ;;  %1154 = vrcp.f32 %v605_v34  ;;  %v1017_v23 = vpack.c.bf16 %v1109_v57, %v1137_v38 }
  0xd4   : > { %v1015_v50 = vpack.c.bf16 %v1135_v49, %v1139_v19  ;;  %v1141_v40 = vpop.eup %1140 }
  0xd5   : > { %v1143_v42 = vpop.eup %1142 }
  0xd6   : > { %1016 = vmatprep.subr.bf16.mxu1 %v1015_v50 }
  0xd7   : > { %1018 = vmatpush1.bf16.msra.mxu1 %v1017_v23  ;;  %v1145_v43 = vpop.eup %1144 }
  0xd8   : > { %v1147_v51 = vpop.eup %1146  ;;  %v1013_v52 = vpack.c.bf16 %v1145_v43, %v1141_v40 }
  0xd9   : > { %v1149_v35 = vpop.eup %1148 }
  0xdb   : > { %v1151_v36 = vpop.eup %1150 }
  0xdc   : > { %v1153_v54 = vpop.eup %1152  ;;  %v1011_v53 = vpack.c.bf16 %v1151_v36, %v1143_v42 }
  0xdd   : > { %v1155_v55 = vpop.eup %1154  ;;  %v1021_v56 = vpack.c.bf16 %v1153_v54, %v1147_v51 }
  0xde   : > { %1012 = vmatprep.subr.bf16.mxu0 %v1011_v53  ;;  %v1019_v59 = vpack.c.bf16 %v1155_v55, %v1149_v35 }
  0xdf   : > { %1014 = vmatpush1.bf16.msra.mxu0 %v1013_v52 }
  0xe0   : > { %1020 = vmatprep.subr.bf16.mxu1 %v1019_v59 }
  0xe1   : > { %1022 = vmatpush1.bf16.msra.mxu1 %v1021_v56 }
  0xe2   : > { %992 = vmatmul.mubr.msk.f32.vlgmr.msra.gmra.mrb[0].mxu0 %vm666_vm0, %v638_v60 }
  0xe3   : > { %749 = vmatprep.mubr.f32.mxu0 %v1239_v15 }
  0xe4   : > { %996 = vmatmul.mubr.msk.f32.vlgmr.msra.gmra.mrb[0].mxu1 %vm666_vm0, %v638_v60 }
  0xe5   : > { %838 = vmatprep.mubr.f32.mxu1 %v1239_v15 }
  0xe6   : > { %993 = vmatmul.mubr.msk.f32.gmra.mrb[2].mxu0 %vm666_vm0, %v639_v58 }
  0xe7   : > { %755 = vmatprep.mubr.f32.mxu0 %v1239_v15 }
  0xe8   : > { %997 = vmatmul.mubr.msk.f32.gmra.mrb[2].mxu1 %vm666_vm0, %v639_v58 }
  0xe9   : > { %844 = vmatprep.mubr.f32.mxu1 %v1239_v15 }
  0xea   : > { %994 = vmatmul.mubr.msk.f32.gmra.mrb[4].mxu0 %vm666_vm0, %v640_v24 }
  0xeb   : > { %761 = vmatprep.mubr.f32.mxu0 %v1239_v15 }
  0xec   : > { %998 = vmatmul.mubr.msk.f32.gmra.mrb[4].mxu1 %vm666_vm0, %v640_v24 }
  0xed   : > { %850 = vmatprep.mubr.f32.mxu1 %v1239_v15 }
  0xee   : > { %995 = vmatmul.mubr.msk.f32.gmra.mrb[6].mxu0 %vm666_vm0, %v641_v39 }
  0xf0   : > { %999 = vmatmul.mubr.msk.f32.gmra.mrb[6].mxu1 %vm666_vm0, %v641_v39 }
 0x1b5   : > { %v745_v1 = vpop.f32.mrb[0].mxu0 }
 0x1b6   : > { %v746_v2 = vadd.f32 %v745_v1, %v649_v0  ;;  %v747_v62 = vpop.f32.mrb[1].mxu0 }
 0x1b7   : > { %v834_v61 = vpop.f32.mrb[0].mxu1  ;;  %v748_v4 = vadd.f32 %v747_v62, %v649_v0 }
 0x1b8   : > { %857 = vst [vmem:[%s1490_s16] sm:$0xff] %v746_v2  ;;  %v835_v15 = vadd.f32 %v834_v61, %v649_v0  ;;  %v836_v5 = vpop.f32.mrb[1].mxu1 }
 0x1b9   : > { %858 = vst [vmem:[%s1490_s16 + $0x8] sm:$0xff] %v748_v4  ;;  %v837_v7 = vadd.f32 %v836_v5, %v649_v0  ;;  %v751_v8 = vpop.f32.mrb[2].mxu0 }
 0x1ba   : > { %859 = vst [vmem:[%s1490_s16 + $0x10] sm:$0xff] %v835_v15  ;;  %v752_v9 = vadd.f32 %v751_v8, %v654_v6  ;;  %v753_v10 = vpop.f32.mrb[3].mxu0 }
 0x1bb   : > { %860 = vst [vmem:[%s1490_s16 + $0x18] sm:$0xff] %v837_v7  ;;  %v840_v11 = vpop.f32.mrb[2].mxu1  ;;  %v754_v12 = vadd.f32 %v753_v10, %v654_v6 }
 0x1bc   : > { %861 = vst [vmem:[%s1490_s16 + $0x20] sm:$0xff] %v752_v9  ;;  %v841_v20 = vadd.f32 %v840_v11, %v654_v6  ;;  %v842_v18 = vpop.f32.mrb[3].mxu1 }
 0x1bd   : > { %862 = vst [vmem:[%s1490_s16 + $0x28] sm:$0xff] %v754_v12  ;;  %v843_v57 = vadd.f32 %v842_v18, %v654_v6  ;;  %v757_v45 = vpop.f32.mrb[4].mxu0 }
 0x1be   : > { %863 = vst [vmem:[%s1490_s16 + $0x30] sm:$0xff] %v841_v20  ;;  %v758_v22 = vadd.f32 %v757_v45, %v659_v21  ;;  %v759_v25 = vpop.f32.mrb[5].mxu0 }
 0x1bf   : > { %864 = vst [vmem:[%s1490_s16 + $0x38] sm:$0xff] %v843_v57  ;;  %v846_v46 = vpop.f32.mrb[4].mxu1  ;;  %v760_v13 = vadd.f32 %v759_v25, %v659_v21 }
 0x1c0   : > { %865 = vst [vmem:[%s1490_s16 + $0x40] sm:$0xff] %v758_v22  ;;  %v847_v26 = vadd.f32 %v846_v46, %v659_v21  ;;  %v848_v41 = vpop.f32.mrb[5].mxu1 }
 0x1c1   : > { %866 = vst [vmem:[%s1490_s16 + $0x48] sm:$0xff] %v760_v13  ;;  %v849_v44 = vadd.f32 %v848_v41, %v659_v21  ;;  %v763_v28 = vpop.f32.mrb[6].mxu0 }
 0x1c2   : > { %867 = vst [vmem:[%s1490_s16 + $0x50] sm:$0xff] %v847_v26  ;;  %v764_v29 = vadd.f32 %v763_v28, %v664_v27  ;;  %v765_v47 = vpop.f32.mrb[7].mxu0 }
 0x1c3   : > { %868 = vst [vmem:[%s1490_s16 + $0x58] sm:$0xff] %v849_v44  ;;  %v852_v14 = vpop.f32.mrb[6].mxu1  ;;  %v766_v16 = vadd.f32 %v765_v47, %v664_v27 }
 0x1c4   : > { %869 = vst [vmem:[%s1490_s16 + $0x60] sm:$0xff] %v764_v29  ;;  %v853_v17 = vadd.f32 %v852_v14, %v664_v27  ;;  %v854_v30 = vpop.f32.mrb[7].mxu1 }
 0x1c5   : > { %870 = vst [vmem:[%s1490_s16 + $0x68] sm:$0xff] %v766_v16  ;;  %v855_v63 = vadd.f32 %v854_v30, %v664_v27 }
 0x1c6   : > { %871 = vst [vmem:[%s1490_s16 + $0x70] sm:$0xff] %v853_v17 }
 0x1c7   : > { %872 = vst [vmem:[%s1490_s16 + $0x78] sm:$0xff] %v855_v63 }
 0x1c8   : > { %1169 = shalt.err (!%p1166_p5)
}
 0x1c9   : > { %s1170_s11 = scalar_lea.hbm %s1510_s29, 2048  ;;  %s1174_s14 = scalar_lea.hbm %s1570_s5, 4096 }
 0x1ca   : > { %p1171_p6 = scmp.ne.s32.totalorder %s1510_s29, %s1170_s11  ;;  %p1175_p10 = scmp.lt.u32.totalorder %s1510_s29, %s1570_s5 }
 0x1cb   : > { %p1176_p11 = scmp.lt.u32.totalorder %s1174_s14, %s1170_s11  ;;  %p1178_p13 = scmp.lt.u32.totalorder %s1170_s11, %s1510_s29 }
 0x1cc   : > { %p1172_p7 = pnand %p1171_p6, %p1313_p4 }
 0x1cd   : > { %p1177_p12 = por %p1176_p11, %p1175_p10 }
 0x1ce   : > { %p1173_p9 = pneg %p1172_p7 }
 0x1cf   : > { %p1179_p0 = por %p1178_p13, %p1177_p12 }
 0x1d1   : > { %p1180_p1 = pnand %p1179_p0, %p1173_p9 }
 0x1d3   : > { %1183 = shalt.err (!%p1180_p1)
}
 0x1d4   : > { %s1241_s17 = smov 512   ;;  %s1242_s25 = smov 32  }
 0x1d5   : > { %1023 = dma.vmem_to_hbm [thread:$0]  (%p1313_p4), %s1512_s24, 2048, %s1510_s29, %s1519_s21, %s1241_s17, %s1241_s17, %s1242_s25  }
 0x1d6 PF: > { %p1029_p2 = scmp.ge.s32.totalorder %s1234_s23, 2  ;;  %s904_s27 = sand.u32 1, %s1214_s18  }
 0x1d7   : > { %s905_s7 = scalar_lea.sflag [#allocation3], %s904_s27 }
 0x1d8   : > { %p1026_p3 = pnand %p1029_p2, %p1320_p8 }
 0x1da   : > { %1209 = dma.done.wait (!%p1026_p3), %s905_s7, 2048  }
 0x1db   : > { %1211 = vsyncadd (!%p1026_p3), %s905_s7, 4294965248  ;;  %s18_s23 = sadd.s32 1, %s1234_s23   ;;  %s1573_s18 = smov %s1218_s19 }
 0x1dc   : > { %p15_p5 = scmp.ge.s32.totalorder %s18_s23, 4   ;;  %s1574_s19 = smov %s1222_s20 }
 0x1dd   : > { %s1575_s20 = smov %s1326_s6  ;;  %s1576_s21 = smov %s1230_s22 }
 0x1de   : > { %s1577_s22 = smov %s1579_s26  ;;  %17 = sbr.rel (!%p15_p5) target bundleno = 4 (0x4), region = 75 }
 0x1e5   :  { %910 = vsyncpa [#allocation3], 1 }
 0x1e6   :  { %912 = vsyncpa [#allocation3 + $0x1], 1 }

</bundles_post_ra>
